<compile_context>
chip_gen: v7x
topology: tpu7x:2x2x1
jax: 0.10.0
libtpu: 0.0.40
codegen_flags: <defaults>
</compile_context>

<pallas_src>
import functools

import jax
import jax.numpy as jnp
from jax.experimental import pallas as pl
from jax.experimental.pallas import tpu as pltpu


def _round_up(x, m):
    return ((x + m - 1) // m) * m


def _lambda_kernel(h_ref, w_ref, b_ref, *rest, z_dim, softplus, training):
    """One batch tile: fused mean/logvar matmul + softplus + reparameterize."""
    if training:
        eps_ref, out_ref = rest
    else:
        (out_ref,) = rest

    # Single fused matmul: (bb, H) @ (H, 2Z) + (1, 2Z), f32 accumulation.
    y = jnp.dot(h_ref[...], w_ref[...],
                preferred_element_type=jnp.float32) + b_ref[...]

    mean = y[:, :z_dim]
    lv = y[:, z_dim:]

    if softplus:
        # Numerically-stable softplus: max(x,0) + log1p(exp(-|x|))
        lv = jnp.maximum(lv, 0.0) + jnp.log1p(jnp.exp(-jnp.abs(lv)))

    if training:
        std = jnp.exp(0.5 * lv)
        z = eps_ref[...].astype(jnp.float32) * std + mean
        out_ref[:, 0:z_dim] = z.astype(out_ref.dtype)
        out_ref[:, z_dim:2 * z_dim] = mean.astype(out_ref.dtype)
        out_ref[:, 2 * z_dim:3 * z_dim] = lv.astype(out_ref.dtype)
    else:
        # z == mean in eval mode; wrapper returns mean for z (no extra store).
        out_ref[:, 0:z_dim] = mean.astype(out_ref.dtype)
        out_ref[:, z_dim:2 * z_dim] = lv.astype(out_ref.dtype)


def lambda_forward(hidden, w_mean, b_mean, w_logvar, b_logvar, eps=None,
                   *, softplus=True, training=False, block_b=512,
                   hidden_bf16=False):
    """JAX wrapper around the Pallas kernel.

    hidden:   (B, H)   float32
    w_mean:   (H, Z)   float32   (= PyTorch weight.T)
    b_mean:   (Z,)     float32
    w_logvar: (H, Z)   float32
    b_logvar: (Z,)     float32
    eps:      (B, Z)   float32   (standard-normal noise; required iff training)
    returns:  (z, mean, logvar), each (B, Z) float32
    """
    B, H = hidden.shape
    Z = w_mean.shape[1]

    # Fused heads: one (H, 2Z) weight, one (1, 2Z) bias.
    w = jnp.concatenate([w_mean, w_logvar], axis=1)
    b = jnp.concatenate([b_mean, b_logvar], axis=0).reshape(1, 2 * Z)

    if hidden_bf16:
        # Halve the dominant HBM read streams; MXU accumulates in f32.
        hidden = hidden.astype(jnp.bfloat16)
        w = w.astype(jnp.bfloat16)

    # Batch tile: large for pipeline efficiency, multiple of 8 (sublane),
    # clamped to the (padded) batch so small demos still work.
    bb = _round_up(min(block_b, _round_up(B, 8)), 8)
    Bp = _round_up(B, bb)
    if Bp != B:
        hidden = jnp.pad(hidden, ((0, Bp - B), (0, 0)))
        if training:
            eps = jnp.pad(eps, ((0, Bp - B), (0, 0)))

    n_out = 3 * Z if training else 2 * Z
    kernel = functools.partial(_lambda_kernel, z_dim=Z,
                               softplus=softplus, training=training)

    in_specs = [
        pl.BlockSpec((bb, H), lambda i: (i, 0)),       # hidden tile
        pl.BlockSpec((H, 2 * Z), lambda i: (0, 0)),    # fused weight (invariant)
        pl.BlockSpec((1, 2 * Z), lambda i: (0, 0)),    # fused bias (invariant)
    ]
    operands = [hidden, w, b]
    if training:
        in_specs.append(pl.BlockSpec((bb, Z), lambda i: (i, 0)))
        operands.append(eps)

    out = pl.pallas_call(
        kernel,
        out_shape=jax.ShapeDtypeStruct((Bp, n_out), jnp.float32),
        grid_spec=pltpu.PrefetchScalarGridSpec(
            num_scalar_prefetch=0,
            grid=(Bp // bb,),
            in_specs=in_specs,
            out_specs=pl.BlockSpec((bb, n_out), lambda i: (i, 0)),
        ),
        compiler_params=pltpu.CompilerParams(
            dimension_semantics=("parallel",)),
    )(*operands)

    out = out[:B]
    if training:
        z = out[:, :Z]
        mean = out[:, Z:2 * Z]
        logvar = out[:, 2 * Z:]
    else:
        mean = out[:, :Z]
        logvar = out[:, Z:]
        z = mean
    return z, mean, logvar


if __name__ == "__main__":
    # Module hyper-params (small, consistent with the PyTorch __init__):
    ZDIMS = 16
    hidden_size_layer_1 = 32
    HID_DIM = hidden_size_layer_1 * 4        # 128
    SOFTPLUS = True
    B = 8

    key = jax.random.PRNGKey(0)
    k_h, k_wm, k_bm, k_wv, k_bv, k_eps = jax.random.split(key, 6)

    # Deterministic PyTorch-style init: U(-1/sqrt(in), 1/sqrt(in))
    bound = 1.0 / jnp.sqrt(jnp.float32(HID_DIM))
    hidden = jax.random.normal(k_h, (B, HID_DIM), dtype=jnp.float32)
    # weights stored already transposed to (H, Z) == PyTorch weight.T
    w_mean = jax.random.uniform(k_wm, (HID_DIM, ZDIMS), jnp.float32, -bound, bound)
    b_mean = jax.random.uniform(k_bm, (ZDIMS,), jnp.float32, -bound, bound)
    w_logvar = jax.random.uniform(k_wv, (HID_DIM, ZDIMS), jnp.float32, -bound, bound)
    b_logvar = jax.random.uniform(k_bv, (ZDIMS,), jnp.float32, -bound, bound)
    # torch.randn_like(std) equivalent (deterministic here)
    eps = jax.random.normal(k_eps, (B, ZDIMS), dtype=jnp.float32)

    # Pure-JAX reference
    mean_ref = hidden @ w_mean + b_mean
    lv_ref = hidden @ w_logvar + b_logvar
    if SOFTPLUS:
        lv_ref = jax.nn.softplus(lv_ref)

    # ---- training mode (reparameterized z) ----
    z, mean, logvar = lambda_forward(
        hidden, w_mean, b_mean, w_logvar, b_logvar, eps,
        softplus=SOFTPLUS, training=True)
    jax.block_until_ready((z, mean, logvar))
    z_ref = eps * jnp.exp(0.5 * lv_ref) + mean_ref
    assert jnp.allclose(mean, mean_ref, atol=1e-5), "mean mismatch (train)"
    assert jnp.allclose(logvar, lv_ref, atol=1e-5), "logvar mismatch (train)"
    assert jnp.allclose(z, z_ref, atol=1e-5), "z mismatch (train)"

    # ---- eval mode (z == mean, no eps stream, no z store) ----
    z_e, mean_e, logvar_e = lambda_forward(
        hidden, w_mean, b_mean, w_logvar, b_logvar,
        softplus=SOFTPLUS, training=False)
    jax.block_until_ready((z_e, mean_e, logvar_e))
    assert jnp.allclose(mean_e, mean_ref, atol=1e-5), "mean mismatch (eval)"
    assert jnp.allclose(logvar_e, lv_ref, atol=1e-5), "logvar mismatch (eval)"
    assert jnp.allclose(z_e, mean_ref, atol=1e-5), "z mismatch (eval)"

    print("KERNEL_OK")
</pallas_src>

<mosaic_0001>
module attributes {stable_mosaic.version = 11 : i64} {
  func.func @_lambda_kernel(%arg0: i32, %arg1: memref<8x128xf32, #tpu.memory_space<vmem>>, %arg2: memref<128x32xf32, #tpu.memory_space<vmem>>, %arg3: memref<1x32xf32, #tpu.memory_space<vmem>>, %arg4: memref<8x16xf32, #tpu.memory_space<vmem>>, %arg5: memref<8x48xf32, #tpu.memory_space<vmem>>) attributes {dimension_semantics = [#tpu.dimension_semantics<parallel>], iteration_bounds = array<i64: 1>, scalar_prefetch = 0 : i64, scratch_operands = 0 : i64, tpu.core_type = #tpu.core_type<tc>, window_params = [{transform_indices = @transform_0, window_bounds = array<i64: 8, 128>}, {pipeline_mode = #tpu.pipeline_mode<synchronous>, transform_indices = @transform_1, window_bounds = array<i64: 128, 32>}, {pipeline_mode = #tpu.pipeline_mode<synchronous>, transform_indices = @transform_2, window_bounds = array<i64: 1, 32>}, {transform_indices = @transform_3, window_bounds = array<i64: 8, 16>}, {transform_indices = @transform_4, window_bounds = array<i64: 8, 48>}]} {
    %c0 = arith.constant 0 : index
    %c0_0 = arith.constant 0 : index
    %0 = vector.load %arg1[%c0, %c0_0] : memref<8x128xf32, #tpu.memory_space<vmem>>, vector<8x128xf32>
    %c0_1 = arith.constant 0 : index
    %c0_2 = arith.constant 0 : index
    %1 = vector.load %arg2[%c0_1, %c0_2] : memref<128x32xf32, #tpu.memory_space<vmem>>, vector<128x32xf32>
    %cst = arith.constant dense<0.000000e+00> : vector<8x32xf32>
    %2 = tpu.matmul %0, %1, %cst {dimension_numbers = #tpu.dot_dimension_numbers<[1], [0], [0], [1], [0, 0, 1, 1], [], []>} : vector<8x128xf32>, vector<128x32xf32>, vector<8x32xf32> -> vector<8x32xf32>
    %c0_3 = arith.constant 0 : index
    %c0_4 = arith.constant 0 : index
    %3 = vector.load %arg3[%c0_3, %c0_4] : memref<1x32xf32, #tpu.memory_space<vmem>>, vector<1x32xf32>
    %4 = vector.broadcast %3 : vector<1x32xf32> to vector<8x32xf32>
    %5 = arith.addf %2, %4 : vector<8x32xf32>
    %6 = vector.extract_strided_slice %5 {offsets = [0, 0], sizes = [8, 16], strides = [1, 1]} : vector<8x32xf32> to vector<8x16xf32>
    %7 = vector.extract_strided_slice %5 {offsets = [0, 16], sizes = [8, 16], strides = [1, 1]} : vector<8x32xf32> to vector<8x16xf32>
    %cst_5 = arith.constant 0.000000e+00 : f32
    %8 = vector.broadcast %cst_5 : f32 to vector<8x16xf32>
    %9 = arith.maximumf %7, %8 : vector<8x16xf32>
    %10 = math.absf %7 : vector<8x16xf32>
    %cst_6 = arith.constant 0.000000e+00 : f32
    %11 = vector.broadcast %cst_6 : f32 to vector<8x16xf32>
    %12 = arith.subf %11, %10 : vector<8x16xf32>
    %13 = math.exp %12 : vector<8x16xf32>
    %14 = math.log1p %13 : vector<8x16xf32>
    %15 = arith.addf %9, %14 : vector<8x16xf32>
    %cst_7 = arith.constant 5.000000e-01 : f32
    %16 = vector.broadcast %cst_7 : f32 to vector<8x16xf32>
    %17 = arith.mulf %16, %15 : vector<8x16xf32>
    %18 = math.exp %17 : vector<8x16xf32>
    %c0_8 = arith.constant 0 : index
    %c0_9 = arith.constant 0 : index
    %19 = vector.load %arg4[%c0_8, %c0_9] : memref<8x16xf32, #tpu.memory_space<vmem>>, vector<8x16xf32>
    %20 = arith.mulf %19, %18 : vector<8x16xf32>
    %21 = arith.addf %20, %6 : vector<8x16xf32>
    %c0_10 = arith.constant 0 : index
    %c0_11 = arith.constant 0 : index
    %22 = vector.load %arg5[%c0_10, %c0_11] : memref<8x48xf32, #tpu.memory_space<vmem>>, vector<8x16xf32>
    tpu.vector_store %arg5[%c0_10, %c0_11], %21 {strides = array<i32>} : memref<8x48xf32, #tpu.memory_space<vmem>>, vector<8x16xf32>,
    %c0_12 = arith.constant 0 : index
    %c16 = arith.constant 16 : index
    %23 = vector.load %arg5[%c0_12, %c16] : memref<8x48xf32, #tpu.memory_space<vmem>>, vector<8x16xf32>
    tpu.vector_store %arg5[%c0_12, %c16], %6 {strides = array<i32>} : memref<8x48xf32, #tpu.memory_space<vmem>>, vector<8x16xf32>,
    %c0_13 = arith.constant 0 : index
    %c32 = arith.constant 32 : index
    %24 = vector.load %arg5[%c0_13, %c32] : memref<8x48xf32, #tpu.memory_space<vmem>>, vector<8x16xf32>
    tpu.vector_store %arg5[%c0_13, %c32], %15 {strides = array<i32>} : memref<8x48xf32, #tpu.memory_space<vmem>>, vector<8x16xf32>,
    return
  }
  func.func @transform_0(%arg0: i32) -> (i32, i32) {
    %c0_i32 = arith.constant 0 : i32
    %c0_i32_0 = arith.constant 0 : i32
    return %arg0, %c0_i32 : i32, i32
  }
  func.func @transform_1(%arg0: i32) -> (i32, i32) {
    %c0_i32 = arith.constant 0 : i32
    %c0_i32_0 = arith.constant 0 : i32
    %c0_i32_1 = arith.constant 0 : i32
    return %c0_i32, %c0_i32_0 : i32, i32
  }
  func.func @transform_2(%arg0: i32) -> (i32, i32) {
    %c0_i32 = arith.constant 0 : i32
    %c0_i32_0 = arith.constant 0 : i32
    %c0_i32_1 = arith.constant 0 : i32
    return %c0_i32, %c0_i32_0 : i32, i32
  }
  func.func @transform_3(%arg0: i32) -> (i32, i32) {
    %c0_i32 = arith.constant 0 : i32
    %c0_i32_0 = arith.constant 0 : i32
    return %arg0, %c0_i32 : i32, i32
  }
  func.func @transform_4(%arg0: i32) -> (i32, i32) {
    %c0_i32 = arith.constant 0 : i32
    %c0_i32_0 = arith.constant 0 : i32
    return %arg0, %c0_i32 : i32, i32
  }
}

</mosaic_0001>

<bundles_post_ra>
// kernel: tpu_custom_call.1
= control target key start
LH: loop header
LB: loop body
LE: loop exit
PB: predicated region body
PF: predicated region fallthrough
CT: control target
= control target key end

     0   :  { %v278_v3 = vmov 0.0|0.0   ;;  %vm279_vm0 = vmmov 0   ;;  %v280_v6 = vmov 0.0   ;;  %s378_s0 = inlined_call_operand.vmem [shape: f32[8,128], index: 0, kind: input, shape index: {}]   ;;  %s379_s1 = inlined_call_operand.vmem [shape: f32[128,32], index: 1, kind: input, shape index: {}]   ;;  %s380_s2 = inlined_call_operand.vmem [shape: f32[1,32], index: 2, kind: input, shape index: {}]   ;;  %s381_s3 = inlined_call_operand.vmem [shape: f32[8,16], index: 3, kind: input, shape index: {}]   ;;  %s382_s4 = inlined_call_operand.hbm [shape: f32[8,48], index: 4, kind: output, shape index: {}]  }
   0x1   :  { %v19_v0 = vld [vmem:[%s379_s1] sm:$0xff]  ;;  %v20_v1 = vld [vmem:[%s379_s1 + $0x8] sm:$0xff]  ;;  %v21_v2 = vld [vmem:[%s379_s1 + $0x10] sm:$0xff]  ;;  %218 = vmatprep.subr.bf16.mxu0 %v278_v3  ;;  %215 = vmatprep.mubr.msk.f32.mxu0 %vm279_vm0, %v280_v6 }
   0x2   :  { %v219_v4 = vpack.c.bf16 %v20_v1, %v19_v0  ;;  %v22_v5 = vld [vmem:[%s379_s1 + $0x18] sm:$0xff]  ;;  %v23_v8 = vld [vmem:[%s379_s1 + $0x20] sm:$0xff]  ;;  %v24_v9 = vld [vmem:[%s379_s1 + $0x28] sm:$0xff] }
   0x3   :  { %v222_v7 = vpack.c.bf16 %v22_v5, %v21_v2 }
   0x4   :  { %220 = vmatpush3.bf16.msra.mxu0 %v219_v4 }
   0x5   :  { %221 = vmatprep.subr.bf16.mxu0 %v278_v3 }
   0x6   :  { %9 = vsyncpa [#allocation3], 0  ;;  %v225_v10 = vpack.c.bf16 %v24_v9, %v23_v8  ;;  %v25_v11 = vld [vmem:[%s379_s1 + $0x30] sm:$0xff]  ;;  %v26_v12 = vld [vmem:[%s379_s1 + $0x38] sm:$0xff]  ;;  %vm137_vm2 = vcmask 130048   ;;  %s283_s26 = smov [#allocation2]  }
   0x7   :  { %v228_v13 = vpack.c.bf16 %v26_v12, %v25_v11  ;;  %v27_v14 = vld [vmem:[%s379_s1 + $0x40] sm:$0xff]  ;;  %v28_v15 = vld [vmem:[%s379_s1 + $0x48] sm:$0xff]  ;;  %v29_v17 = vld [vmem:[%s379_s1 + $0x50] sm:$0xff]  ;;  %s157_s27 = sshll.u32 %s283_s26, 4  ;;  %vm143_vm3 = vcmask 261248   ;;  %vm149_vm4 = vcmask 392448   ;;  %s158_s27 = int_to_ptr.vmem [resolvable:$true] %s157_s27 }
   0x8   :  { %223 = vmatpush3.bf16.msra.mxu0 %v222_v7  ;;  %v231_v16 = vpack.c.bf16 %v28_v15, %v27_v14  ;;  %v30_v18 = vld [vmem:[%s379_s1 + $0x58] sm:$0xff]  ;;  %v31_v20 = vld [vmem:[%s379_s1 + $0x60] sm:$0xff]  ;;  %v32_v21 = vld [vmem:[%s379_s1 + $0x68] sm:$0xff]  ;;  %s254_s28 = scalar_lea.vmem %s158_s27, 128  ;;  %p259_p1 = scmp.lt.s32.totalorder %s158_s27, %s158_s27 }
   0x9   :  { %224 = vmatprep.subr.bf16.mxu0 %v278_v3  ;;  %v234_v19 = vpack.c.bf16 %v30_v18, %v29_v17  ;;  %v237_v22 = vpack.c.bf16 %v32_v21, %v31_v20  ;;  %v33_v23 = vld [vmem:[%s379_s1 + $0x70] sm:$0xff]  ;;  %v34_v24 = vld [vmem:[%s379_s1 + $0x78] sm:$0xff]  ;;  %v18_v26 = vld [vmem:[%s378_s0] sm:$0xff]  ;;  %s281_s0 = smov 16   ;;  %s282_s1 = smov 112  }
   0xa   :  { %v240_v25 = vpack.c.bf16 %v34_v24, %v33_v23  ;;  %v165_v27 = vld [vmem:[%s380_s2] ss:$0 sm:$0xff]  ;;  %p255_p0 = scmp.ne.s32.totalorder %s158_s27, %s254_s28  ;;  %p260_p2 = scmp.lt.s32.totalorder %s254_s28, %s254_s28 }
   0xb   :  { %v130_v48 = vld [vmem:[%s381_s3] sm:$0xff] }
   0xc   :  { %226 = vmatpush3.bf16.msra.mxu0 %v225_v10  ;;  %p261_p3 = por %p260_p2, %p259_p1 }
   0xd   :  { %227 = vmatprep.subr.bf16.mxu0 %v278_v3 }
   0xe   :  { %p262_p4 = pnand %p261_p3, %p255_p0 }
  0x10   :  { %229 = vmatpush3.bf16.msra.mxu0 %v228_v13 }
  0x11   :  { %230 = vmatprep.subr.bf16.mxu0 %v278_v3 }
  0x14   :  { %232 = vmatpush3.bf16.msra.mxu0 %v231_v16 }
  0x15   :  { %233 = vmatprep.subr.bf16.mxu0 %v278_v3 }
  0x18   :  { %235 = vmatpush3.bf16.msra.mxu0 %v234_v19 }
  0x19   :  { %236 = vmatprep.subr.bf16.mxu0 %v278_v3 }
  0x1c   :  { %238 = vmatpush3.bf16.msra.mxu0 %v237_v22 }
  0x1d   :  { %239 = vmatprep.subr.bf16.mxu0 %v278_v3 }
  0x20   :  { %241 = vmatpush3.bf16.msra.mxu0 %v240_v25 }
  0x23   :  { %216 = vmatmul.mubr.f32.vlgmr.msra.gmra.mrb[0].mxu0 %v18_v26 }
  0xf6   :  { %v108_v28 = vpop.f32.mrb[0].mxu0 }
  0xf7   :  { %v109_v29 = vadd.f32 %v165_v27, %v108_v28  ;;  %v217_v30 = vpop.f32.mrb[1].mxu0 }
  0xf9   :  { %v113_v31 = vand.u32 2147483647, %v109_v29  ;;  %v112_v42 = vmax.f32 %v109_v29, 0.0 }
  0xfb   :  { %v114_v32 = vsub.f32 0.0, %v113_v31 }
  0xfd   :  { %v115_v33 = vmul.f32 1.442695, %v114_v32 }
  0xff   :  { %248 = vpow2.f32 %v115_v33 }
 0x109   :  { %v249_v34 = vpop.eup %248 }
 0x10a   :  { %v117_v35 = vadd.f32 1.0, %v249_v34  ;;  %v120_v36 = vmul.f32 -0.5, %v249_v34  ;;  %v123_v38 = vand.u32 2147483647, %v249_v34 }
 0x10c   :  { %250 = vlog2.f32 %v117_v35  ;;  %v121_v37 = vadd.f32 1.0, %v120_v36  ;;  %vm124_vm1 = vcmp.lt.f32.partialorder %v123_v38, 0.0004427343 }
 0x10e   :  { %v122_v41 = vmul.f32 %v249_v34, %v121_v37 }
 0x116   :  { %v251_v39 = vpop.eup %250 }
 0x117   :  { %v119_v40 = vmul.f32 0.6931472, %v251_v39 }
 0x119   :  { %v125_v43 = vsel %vm124_vm1, %v122_v41, %v119_v40 }
 0x11a   :  { %v126_v44 = vadd.f32 %v125_v43, %v112_v42 }
 0x11c   :  { %146 = vrot.lane.b32.xlu1 %v126_v44, %s281_s0  ;;  %v127_v45 = vmul.f32 0.5, %v126_v44 }
 0x11e   :  { %v128_v46 = vmul.f32 1.442695, %v127_v45 }
 0x120   :  { %252 = vpow2.f32 %v128_v46 }
 0x12a   :  { %v253_v47 = vpop.eup %252 }
 0x12b   :  { %132 = vrot.lane.b32.xlu0 %v253_v47, %s282_s1 }
 0x12f   :  { %140 = vrot.lane.b32.xlu0 %v109_v29, %s281_s0 }
 0x18e   :  { %v147_v53 = vpop.permute.xlu1 %146 }
 0x19d   :  { %v133_v49 = vpop.permute.xlu0 %132 }
 0x19e   :  { %v135_v50 = vmul.f32 %v133_v49, %v130_v48 }
 0x1a0   :  { %v136_v51 = vadd.f32 %v135_v50, %v109_v29 }
 0x1a1   :  { %v141_v52 = vpop.permute.xlu0 %140 }
 0x1a2   :  { %138 = vst.msk [vmem:[#allocation2] sm:$0xff] %vm137_vm2, %v136_v51 }
 0x1a3   :  { %144 = vst.msk [vmem:[#allocation2] sm:$0xff] %vm143_vm3, %v141_v52 }
 0x1a4   :  { %150 = vst.msk [vmem:[#allocation2] sm:$0xff] %vm149_vm4, %v147_v53 }
 0x1a5   :  { %265 = shalt.err (!%p262_p4)
}
 0x1a6   :  { %s266_s30 = scalar_lea.hbm %s382_s4, 128 }
 0x1a7   :  { %p267_p5 = scmp.ne.s32.totalorder %s382_s4, %s266_s30  ;;  %p270_p6 = scmp.lt.u32.totalorder %s266_s30, %s382_s4 }
 0x1a9   :  { %p272_p7 = pnand %p270_p6, %p267_p5 }
 0x1ab   :  { %275 = shalt.err (!%p272_p7)
}
 0x1ac   :  { %160 = dma.vmem_to_hbm [thread:$0]  %s158_s27, 128, %s382_s4, [#allocation3]  }
 0x1ad   :  { %276 = dma.done.wait [#allocation3], 128  }
 0x1ae   :  { %277 = vsyncadd [#allocation3], 4294967168 }
 0x1af   :  { %164 = vsyncpa [#allocation3], 1 }

</bundles_post_ra>
